<compile_context>
chip_gen: v7x
topology: tpu7x:2x2x1
jax: 0.10.0
libtpu: 0.0.40
codegen_flags: <defaults>
</compile_context>

<pallas_src>
import jax
import jax.numpy as jnp
from jax.experimental import pallas as pl
from jax.experimental.pallas import tpu as pltpu

LANE = 128


def _round_up(x: int, m: int) -> int:
    return ((x + m - 1) // m) * m


def _cdiv(a: int, b: int) -> int:
    return -(-a // b)


def _dagma_linear_kernel(x_ref, wt_ref, o_ref, acc_ref):
    # x_ref : (tm, tk)   row tile of the input batch
    # wt_ref: (tk, tn)   tile of the pre-transposed weight (W.T)
    # o_ref : (tm, tn)   output tile
    # acc_ref: (tm, tn)  f32 accumulator, resident across the K grid axis
    @pl.when(pl.program_id(2) == 0)
    def _():
        acc_ref[...] = jnp.zeros_like(acc_ref)

    acc_ref[...] += jnp.dot(
        x_ref[...], wt_ref[...], preferred_element_type=jnp.float32
    )

    @pl.when(pl.program_id(2) == pl.num_programs(2) - 1)
    def _():
        o_ref[...] = acc_ref[...].astype(o_ref.dtype)


def dagma_linear_forward(
    x: jax.Array,
    w: jax.Array,
    *,
    tm: int | None = None,
    tn: int | None = None,
    tk: int | None = None,
    compute_dtype=jnp.float32,
    w_is_transposed: bool = False,
) -> jax.Array:
    """Computes x @ w.T with a Pallas TPU kernel.

    x: (n, K) float
    w: (D_out, K) float (torch nn.Linear layout), or (K, D_out) if
       w_is_transposed=True.
    returns: (n, D_out) float32
    """
    n, k = x.shape
    if w_is_transposed:
        k_in, d_out = w.shape
        wt = w.astype(compute_dtype)
    else:
        d_out, k_in = w.shape
        wt = w.astype(compute_dtype).T  # transposed once, outside the kernel
    assert k_in == k, "weight in_features must match x feature dim"
    x = x.astype(compute_dtype)
    in_itemsize = jnp.dtype(compute_dtype).itemsize

    # ---- generation-aware VMEM budget (never request the full physical VMEM)
    try:
        vmem_cap = int(pltpu.get_tpu_info().vmem_capacity_bytes)
    except Exception:  # pragma: no cover - conservative fallback (ok on any gen)
        vmem_cap = 64 << 20
    budget = int(0.80 * vmem_cap)
    big_vmem = vmem_cap >= (100 << 20)  # v5e / v6e class (128 MiB)

    if tm is None:
        tm = 1024 if big_vmem else 512
    if tn is None:
        tn = 512
    if tk is None:
        tk = 512

    # ---- padded extents (lane dims must be multiples of 128)
    k128 = _round_up(k, LANE)
    d128 = _round_up(d_out, LANE)

    # Prefer a single column / single K tile (weight grid-invariant) when the
    # full extent is within the requested cap; otherwise tile.
    tn_cap = max(LANE, min(_round_up(tn, LANE), d128))
    tk_cap = max(LANE, min(_round_up(tk, LANE), k128))
    tn_eff = d128 if d128 <= tn_cap else tn_cap
    tk_eff = k128 if k128 <= tk_cap else tk_cap

    # Balanced row tiles: avoid padding n far beyond a multiple of tm.
    n8 = _round_up(max(n, 1), 8)
    if n8 <= tm:
        tm_eff = n8
    else:
        n_row_tiles = _cdiv(n, tm)
        tm_eff = _round_up(_cdiv(n, n_row_tiles), 8)

    def est_bytes(tm_, tn_, tk_):
        cols_ = _cdiv(d128, tn_)
        kt_ = _cdiv(k128, tk_)
        w_bufs_ = 1 if (cols_ == 1 and kt_ == 1) else 2
        x_blk = tm_ * tk_ * in_itemsize
        w_blk = tk_ * tn_ * in_itemsize
        o_blk = tm_ * tn_ * 4
        acc_blk = tm_ * tn_ * 4
        est_ = 2 * x_blk + w_bufs_ * w_blk + 2 * o_blk + acc_blk + (2 << 20)
        return est_, w_bufs_

    # Shrink tiles (not just the limit) until the estimate fits the budget.
    while True:
        est, w_bufs = est_bytes(tm_eff, tn_eff, tk_eff)
        if est <= budget:
            break
        if tm_eff > 256:
            tm_eff = _round_up(tm_eff // 2, 8)
        elif tn_eff > 256:
            tn_eff = _round_up(tn_eff // 2, LANE)
        elif tk_eff > 256:
            tk_eff = _round_up(tk_eff // 2, LANE)
        elif tm_eff > 8:
            tm_eff = max(8, _round_up(tm_eff // 2, 8))
        else:
            break  # smallest legal tiles; best effort

    rows = _cdiv(n, tm_eff)
    cols = _cdiv(d128, tn_eff)
    kt = _cdiv(k128, tk_eff)

    # Megacore: ensure >=2 steps on a parallel axis when there is enough work
    # (v7x has 2 TensorCores; no-op cost on single-TC v5e/v6e).
    if rows * cols == 1 and n8 >= 16:
        tm_eff = _round_up(_cdiv(n, 2), 8)
        rows = 2

    n_pad = rows * tm_eff
    d_pad = cols * tn_eff
    k_pad = kt * tk_eff

    est, w_bufs = est_bytes(tm_eff, tn_eff, tk_eff)
    w_blk = tk_eff * tn_eff * in_itemsize
    if w_bufs == 2 and big_vmem and est + w_blk <= budget:
        w_bufs = 3  # deeper weight pipeline when streaming and VMEM allows
        est += w_blk

    # ---- zero-pad inputs (numerically free: padded K rows/cols are zero)
    if n_pad != n or k_pad != k:
        x = jnp.pad(x, ((0, n_pad - n), (0, k_pad - k)))
    if k_pad != k or d_pad != d_out:
        wt = jnp.pad(wt, ((0, k_pad - k), (0, d_pad - d_out)))

    vmem_limit = int(min(max(est, 32 << 20), budget))

    # HBM traffic: weight is re-fetched once per row tile when it is streamed.
    w_refetch = 1 if (cols == 1 and kt == 1) else rows
    cost = pl.CostEstimate(
        flops=2 * n_pad * k_pad * d_pad,
        bytes_accessed=in_itemsize * (n_pad * k_pad + w_refetch * k_pad * d_pad)
        + 4 * n_pad * d_pad,
        transcendentals=0,
    )

    grid_spec = pltpu.PrefetchScalarGridSpec(
        num_scalar_prefetch=0,
        grid=(rows, cols, kt),
        in_specs=[
            pl.BlockSpec((tm_eff, tk_eff), lambda i, j, kk: (i, kk)),
            pl.BlockSpec(
                (tk_eff, tn_eff),
                lambda i, j, kk: (kk, j),
                pipeline_mode=pl.Buffered(w_bufs),
            ),
        ],
        out_specs=pl.BlockSpec((tm_eff, tn_eff), lambda i, j, kk: (i, j)),
        scratch_shapes=[pltpu.VMEM((tm_eff, tn_eff), jnp.float32)],
    )

    out = pl.pallas_call(
        _dagma_linear_kernel,
        out_shape=jax.ShapeDtypeStruct((n_pad, d_pad), jnp.float32),
        grid_spec=grid_spec,
        compiler_params=pltpu.CompilerParams(
            dimension_semantics=("parallel", "parallel", "arbitrary"),
            vmem_limit_bytes=vmem_limit,
        ),
        cost_estimate=cost,
    )(x, wt)

    if n_pad != n or d_pad != d_out:
        out = out[:n, :d_out]
    return out


if __name__ == "__main__":
    key = jax.random.PRNGKey(0)
    kw1, kx1, kw2, kx2 = jax.random.split(key, 4)

    # Case 1: module DagmaLinear(d=16) => D = 2*d = 32; small batch n = 64.
    # (The module initializes fc1.weight to zeros; use a small deterministic
    #  non-zero init so the matmul path is actually exercised/verified.)
    D1, n1 = 32, 64
    w1 = 0.01 * jax.random.normal(kw1, (D1, D1), dtype=jnp.float32)
    x1 = jax.random.normal(kx1, (n1, D1), dtype=jnp.float32)
    out1 = jax.block_until_ready(dagma_linear_forward(x1, w1))
    ref1 = x1 @ w1.T
    assert out1.shape == (n1, D1)
    assert jnp.allclose(out1, ref1, atol=1e-4, rtol=1e-4), "mismatch (n=64, D=32)"

    # Case 2: DagmaLinear(d=128) => D = 256, n = 200, with small explicit tile
    # sizes to exercise the K-tiling accumulator, column tiling and padding.
    D2, n2 = 256, 200
    w2 = 0.01 * jax.random.normal(kw2, (D2, D2), dtype=jnp.float32)
    x2 = jax.random.normal(kx2, (n2, D2), dtype=jnp.float32)
    out2 = jax.block_until_ready(
        dagma_linear_forward(x2, w2, tm=128, tn=128, tk=128)
    )
    ref2 = x2 @ w2.T
    assert out2.shape == (n2, D2)
    assert jnp.allclose(out2, ref2, atol=1e-4, rtol=1e-4), "mismatch (n=200, D=256)"

    print("KERNEL_OK")
</pallas_src>

<mosaic_0001>
module attributes {stable_mosaic.version = 11 : i64} {
  func.func @_dagma_linear_kernel(%arg0: i32, %arg1: i32, %arg2: i32, %arg3: memref<32x128xf32, #tpu.memory_space<vmem>>, %arg4: memref<128x128xf32, #tpu.memory_space<vmem>>, %arg5: memref<32x128xf32, #tpu.memory_space<vmem>>, %arg6: memref<32x128xf32, #tpu.memory_space<vmem>>) attributes {dimension_semantics = [#tpu.dimension_semantics<parallel>, #tpu.dimension_semantics<parallel>, #tpu.dimension_semantics<arbitrary>], iteration_bounds = array<i64: 2, 1, 1>, scalar_prefetch = 0 : i64, scratch_operands = 1 : i64, tpu.core_type = #tpu.core_type<tc>, window_params = [{transform_indices = @transform_0, window_bounds = array<i64: 32, 128>}, {pipeline_mode = #tpu.pipeline_mode<synchronous>, transform_indices = @transform_1, window_bounds = array<i64: 128, 128>}, {transform_indices = @transform_2, window_bounds = array<i64: 32, 128>}]} {
    %c0_i32 = arith.constant 0 : i32
    %0 = arith.cmpi eq, %arg2, %c0_i32 : i32
    %1 = arith.extui %0 : i1 to i32
    %c0_i32_0 = arith.constant 0 : i32
    %2 = arith.cmpi ne, %1, %c0_i32_0 : i32
    scf.if %2 {
      %cst_10 = arith.constant 0.000000e+00 : f32
      %12 = vector.broadcast %cst_10 : f32 to vector<32x128xf32>
      %c0_11 = arith.constant 0 : index
      %c0_12 = arith.constant 0 : index
      %13 = vector.load %arg6[%c0_11, %c0_12] : memref<32x128xf32, #tpu.memory_space<vmem>>, vector<32x128xf32>
      tpu.vector_store %arg6[%c0_11, %c0_12], %12 {strides = array<i32>} : memref<32x128xf32, #tpu.memory_space<vmem>>, vector<32x128xf32>,
    } else {
    }
    %c0 = arith.constant 0 : index
    %c0_1 = arith.constant 0 : index
    %3 = vector.load %arg6[%c0, %c0_1] : memref<32x128xf32, #tpu.memory_space<vmem>>, vector<32x128xf32>
    %c0_2 = arith.constant 0 : index
    %c0_3 = arith.constant 0 : index
    %4 = vector.load %arg3[%c0_2, %c0_3] : memref<32x128xf32, #tpu.memory_space<vmem>>, vector<32x128xf32>
    %c0_4 = arith.constant 0 : index
    %c0_5 = arith.constant 0 : index
    %5 = vector.load %arg4[%c0_4, %c0_5] : memref<128x128xf32, #tpu.memory_space<vmem>>, vector<128x128xf32>
    %cst = arith.constant dense<0.000000e+00> : vector<32x128xf32>
    %6 = tpu.matmul %4, %5, %cst {dimension_numbers = #tpu.dot_dimension_numbers<[1], [0], [0], [1], [0, 0, 1, 1], [], []>} : vector<32x128xf32>, vector<128x128xf32>, vector<32x128xf32> -> vector<32x128xf32>
    %7 = arith.addf %3, %6 : vector<32x128xf32>
    %c0_6 = arith.constant 0 : index
    %c0_7 = arith.constant 0 : index
    %8 = vector.load %arg6[%c0_6, %c0_7] : memref<32x128xf32, #tpu.memory_space<vmem>>, vector<32x128xf32>
    tpu.vector_store %arg6[%c0_6, %c0_7], %7 {strides = array<i32>} : memref<32x128xf32, #tpu.memory_space<vmem>>, vector<32x128xf32>,
    %c0_i32_8 = arith.constant 0 : i32
    %9 = arith.cmpi eq, %arg2, %c0_i32_8 : i32
    %10 = arith.extui %9 : i1 to i32
    %c0_i32_9 = arith.constant 0 : i32
    %11 = arith.cmpi ne, %10, %c0_i32_9 : i32
    scf.if %11 {
      %c0_10 = arith.constant 0 : index
      %c0_11 = arith.constant 0 : index
      %12 = vector.load %arg6[%c0_10, %c0_11] : memref<32x128xf32, #tpu.memory_space<vmem>>, vector<32x128xf32>
      %c0_12 = arith.constant 0 : index
      %c0_13 = arith.constant 0 : index
      %13 = vector.load %arg5[%c0_12, %c0_13] : memref<32x128xf32, #tpu.memory_space<vmem>>, vector<32x128xf32>
      tpu.vector_store %arg5[%c0_12, %c0_13], %12 {strides = array<i32>} : memref<32x128xf32, #tpu.memory_space<vmem>>, vector<32x128xf32>,
    } else {
    }
    return
  }
  func.func @transform_0(%arg0: i32, %arg1: i32, %arg2: i32) -> (i32, i32) {
    %c0_i32 = arith.constant 0 : i32
    return %arg0, %arg2 : i32, i32
  }
  func.func @transform_1(%arg0: i32, %arg1: i32, %arg2: i32) -> (i32, i32) {
    %c0_i32 = arith.constant 0 : i32
    return %arg2, %arg1 : i32, i32
  }
  func.func @transform_2(%arg0: i32, %arg1: i32, %arg2: i32) -> (i32, i32) {
    %c0_i32 = arith.constant 0 : i32
    return %arg0, %arg1 : i32, i32
  }
}

</mosaic_0001>

<bundles_post_ra>
// kernel: tpu_custom_call.1
= control target key start
LH: loop header
LB: loop body
LE: loop exit
PB: predicated region body
PF: predicated region fallthrough
CT: control target
= control target key end

     0   :  { %7 = vsyncpa [#allocation4], 0  ;;  %s1073_s0 = inlined_call_operand.hbm [shape: f32[64,128], index: 0, kind: input, shape index: {}]   ;;  %s1074_s1 = inlined_call_operand.hbm [shape: f32[128,128], index: 1, kind: input, shape index: {}]   ;;  %s1075_s2 = inlined_call_operand.hbm [shape: f32[64,128], index: 2, kind: output, shape index: {}]  }
   0x1   :  { %9 = vsyncpa [#allocation4 + $0x1], 0 }
   0x2   :  { %10 = vsyncpa [#allocation7], 0 }
   0x3   :  { %11 = vsyncpa [#allocation5], 0 }
   0x4   :  { %13 = vsyncpa [#allocation5 + $0x1], 0  ;;  %s838_s9 = smov 0   ;;  %s840_s10 = smov 0  }
   0x5   :  { %s842_s11 = smov 0   ;;  %s844_s12 = smov 0  }
   0x6   :  { %s846_s13 = smov 0   ;;  %s848_s14 = smov 0  }
   0x7 LB: > { %s468_s15 = sadd.s32 4294967295, %s814_s14   ;;  %s469_s16 = sadd.s32 4294967294, %s814_s14   ;;  %s814_s14 = sphi %s848_s14, %s19_s14   ;;  %s810_s13 = sphi %s846_s13, %s1099_s13   ;;  %s806_s12 = sphi %s844_s12, %s1098_s12   ;;  %s802_s11 = sphi %s842_s11, %s1097_s11   ;;  %s798_s10 = sphi %s840_s10, %s1096_s10   ;;  %s794_s9 = sphi %s838_s9, %s1095_s9  }
   0x8   : > { %p60_p0 = scmp.ne.s32.totalorder %s798_s10, %s794_s9  ;;  %p872_p1 = scmp.eq.s32.totalorder %s468_s15, 0 }
   0x9   : > { %p876_p2 = scmp.eq.s32.totalorder %s468_s15, 1  ;;  %p120_p3 = scmp.eq.s32.totalorder %s469_s16, 1 }
   0xa   : > { %s1080_s17 = scalar_select %p872_p1, 1, 0 }
   0xb   : > { %s1081_s18 = scalar_select %p876_p2, 1, 0 }
   0xc   : > { %p882_p4 = por %p872_p1, %p60_p0  ;;  %p470_p5 = scmp.ge.s32.totalorder %s814_s14, 1 }
   0xd   : > { %p887_p6 = por %p120_p3, %p60_p0  ;;  %p127_p7 = scmp.lt.s32.totalorder %s814_s14, 3 }
   0xe   : > { %s1082_s19 = scalar_select %p882_p4, 1, 0 }
   0xf   : > { %s1083_s20 = scalar_select %p887_p6, 1, 0 }
  0x10   : > { %p892_p8 = pnand %p470_p5, %p127_p7  ;;  %s816_s22 = smov [#allocation6]  }
  0x11   : > { %s143_s23 = sshll.u32 %s816_s22, 4  ;;  %s38_s25 = sadd.s32 1, %s810_s13  ;;  %s144_s23 = int_to_ptr.vmem [resolvable:$true] %s143_s23 }
  0x12   : > { %s1084_s21 = scalar_select %p892_p8, 1, 0 }
  0x13   : > { %p601_p9 = pneg %p892_p8  ;;  %s670_s28 = scalar_lea.hbm %s1074_s1, 2048 }
  0x14   : > { %p671_p12 = scmp.ne.s32.totalorder %s1074_s1, %s670_s28  ;;  %p677_p5 = scmp.lt.u32.totalorder %s670_s28, %s1074_s1 }
  0x15   : > { %p901_p11 = pnand %p601_p9, %p872_p1 }
  0x17   : > { %p672_p13 = pneg %p901_p11 }
  0x19   : > { %p673_p0 = pnand %p672_p13, %p671_p12 }
  0x1b   : > { %p674_p3 = pneg %p673_p0 }
  0x1d   : > { %p679_p7 = pnand %p677_p5, %p674_p3 }
  0x1f   : > { %682 = shalt.err (!%p679_p7)
}
  0x20   : > { %s683_s5 = scalar_lea.vmem %s144_s23, 2048  ;;  %p691_p1 = scmp.lt.s32.totalorder %s144_s23, %s144_s23 }
  0x21   : > { %p684_p9 = scmp.ne.s32.totalorder %s144_s23, %s683_s5  ;;  %p692_p4 = scmp.lt.s32.totalorder %s683_s5, %s683_s5 }
  0x23   : > { %p686_p10 = pnand %p684_p9, %p672_p13  ;;  %p693_p8 = por %p692_p4, %p691_p1 }
  0x25   : > { %p687_p6 = pneg %p686_p10 }
  0x27   : > { %p694_p2 = pnand %p693_p8, %p687_p6 }
  0x29   : > { %697 = shalt.err (!%p694_p2)
}
  0x2a   : > { %s817_s6 = smov 128   ;;  %s818_s7 = smov 8  }
  0x2b   : > { %604 = dma.hbm_to_vmem [thread:$0]  (!%p901_p11), %s1074_s1, 2048, %s144_s23, [#allocation7], %s817_s6, %s817_s6, %s818_s7  }
  0x2c   : > { %p40_p1 = scmp.ge.s32.totalorder %s38_s25, 2  ;;  %s47_s16 = sadd.s32 1, %s802_s11 }
  0x2d   : > { %p54_p2 = scmp.ne.s32.totalorder %s802_s11, %s798_s10  ;;  %p55_p4 = scmp.eq.s32.totalorder %s814_s14, 0 }
  0x2e   : > { %s1101_s25 = smov (%p40_p1, %s38_s25), 0  ;;  %p1087_p8 = scmp.ne.s32.totalorder %s1081_s18, 0 }
  0x2f   : > { %p931_p6 = por %p55_p4, %p54_p2  ;;  %s42_s26 = ssub.s32 %s810_s13, %s1101_s25 }
  0x30   : > { %p937_p10 = por %p1087_p8, %p54_p2  ;;  %p614_p12 = scmp.lt.s32.totalorder %s814_s14, 2 }
  0x31   : > { %p45_p11 = scmp.eq.s32.totalorder %s42_s26, 0  ;;  %s157_s23 = sand.u32 1, %s802_s11  }
  0x32   : > { %s473_s27 = sshll.u32 %s157_s23, 5  ;;  %s485_s29 = sshll.u32 %s810_s13, 9 }
  0x33   : > { %s946_s28 = scalar_select %p45_p11, %s802_s11, %s47_s16  }
  0x34   : > { %s952_s4 = scalar_lea.hbm %s1073_s0, %s485_s29  ;;  %s161_s18 = scalar_lea.vmem [#allocation3], %s473_s27 }
  0x35   : > { %s169_s5 = sshll.u32 %s161_s18, 4  ;;  %p958_p13 = pnand %p614_p12, %p931_p6  ;;  %s954_s5 = int_to_ptr.vmem [resolvable:$true] %s169_s5 }
  0x36   : > { %s962_s15 = scalar_lea.sflag [#allocation4], %s157_s23  ;;  %s698_s16 = scalar_lea.hbm %s952_s4, 512 }
  0x37   : > { %p699_p0 = scmp.ne.s32.totalorder %s952_s4, %s698_s16  ;;  %p700_p3 = pneg %p958_p13 }
  0x38   : > { %s703_s22 = scalar_lea.hbm %s1073_s0, 1024  ;;  %p704_p9 = scmp.lt.u32.totalorder %s952_s4, %s1073_s0 }
  0x39   : > { %p701_p5 = pnand %p700_p3, %p699_p0  ;;  %p705_p1 = scmp.lt.u32.totalorder %s703_s22, %s698_s16 }
  0x3a   : > { %p707_p4 = scmp.lt.u32.totalorder %s698_s16, %s952_s4 }
  0x3b   : > { %p702_p7 = pneg %p701_p5  ;;  %p706_p2 = por %p705_p1, %p704_p9 }
  0x3d   : > { %p708_p6 = por %p707_p4, %p706_p2 }
  0x3f   : > { %p709_p8 = pnand %p708_p6, %p702_p7 }
  0x41   : > { %712 = shalt.err (!%p709_p8)
}
  0x42   : > { %s713_s23 = scalar_lea.vmem %s954_s5, 512  ;;  %s819_s3 = smov [#allocation3]  }
  0x43   : > { %p714_p12 = scmp.ne.s32.totalorder %s954_s5, %s713_s23  ;;  %s718_s18 = sshll.u32 %s819_s3, 4  ;;  %s719_s18 = int_to_ptr.vmem [resolvable:$false] %s718_s18 }
  0x44   : > { %s720_s26 = scalar_lea.vmem %s719_s18, 1024  ;;  %p721_p5 = scmp.lt.s32.totalorder %s954_s5, %s719_s18 }
  0x45   : > { %p716_p11 = pnand %p714_p12, %p700_p3  ;;  %p722_p9 = scmp.lt.s32.totalorder %s720_s26, %s713_s23 }
  0x47   : > { %p717_p0 = pneg %p716_p11  ;;  %p723_p1 = por %p722_p9, %p721_p5 }
  0x49   : > { %p724_p2 = pnand %p723_p1, %p717_p0 }
  0x4b   : > { %727 = shalt.err (!%p724_p2)
}
  0x4c   : > { %608 = dma.hbm_to_vmem [thread:$0]  (!%p958_p13), %s952_s4, 512, %s954_s5, %s962_s15, %s817_s6, %s817_s6, %s818_s7  }
  0x4d   : > { %p1090_p3 = scmp.ne.s32.totalorder %s1084_s21, 0 }
  0x4e   : > { %s996_s16 = sand.u32 (!%p1090_p3), 1, %s798_s10   ;;  %p1091_p7 = scmp.ne.s32.totalorder (!%p1090_p3), %s1082_s19, 0 }
  0x4f   : > { %181 = sbr.rel (%p1090_p3) target bundleno = 353 (0x161), region = 28  ;;  %s477_s27 = sshll.u32 (!%p1090_p3), %s996_s16, 5 }
  0x50   : > { %s184_s22 = scalar_lea.sflag (!%p1090_p3), [#allocation4], %s996_s16  ;;  %s1002_s8 = scalar_lea.vmem (!%p1090_p3), [#allocation3], %s477_s27 }
  0x56   : > { %781 = dma.done.wait (%p1091_p7), %s184_s22, 512  }
  0x57   : > { %783 = vsyncadd (%p1091_p7), %s184_s22, 4294966784  ;;  %p1092_p13 = scmp.ne.s32.totalorder %s1080_s17, 0 }
  0x59   : > { %785 = dma.done.wait (%p1092_p13), [#allocation7], 2048  }
  0x5a   : > { %787 = vsyncadd (%p1092_p13), [#allocation7], 4294965248  ;;  %v231_v0 = vld [vmem:[#allocation6] sm:$0xff]  ;;  %v232_v1 = vld [vmem:[#allocation6 + $0x8] sm:$0xff]  ;;  %s211_s17 = scalar_lea.vmem [#allocation8], %s477_s27  ;;  %s486_s21 = sshll.u32 %s806_s12, 9 }
  0x5b   : > { %v233_v2 = vld [vmem:[#allocation6 + $0x10] sm:$0xff]  ;;  %v545_v3 = vpack.c.bf16 %v232_v1, %v231_v0  ;;  %v234_v4 = vld [vmem:[#allocation6 + $0x18] sm:$0xff]  ;;  %v235_v6 = vld [vmem:[#allocation6 + $0x20] sm:$0xff]  ;;  %s366_s19 = sshll.u32 %s211_s17, 4  ;;  %s1024_s4 = scalar_lea.hbm %s1075_s2, %s486_s21  ;;  %s1019_s19 = int_to_ptr.vmem [resolvable:$true] %s366_s19 }
  0x5c   : > { %v549_v5 = vpack.c.bf16 %v234_v4, %v233_v2  ;;  %v236_v7 = vld [vmem:[#allocation6 + $0x28] sm:$0xff]  ;;  %v227_v9 = vld [vmem:[%s1002_s8] sm:$0xff]  ;;  %v229_v10 = vld [vmem:[%s1002_s8 + $0x10] sm:$0xff]  ;;  %s352_s5 = scalar_lea.sflag [#allocation5], %s996_s16  ;;  %s728_s12 = scalar_lea.vmem %s1019_s19, 512 }
  0x5d   : > { %546 = vmatprep.subr.bf16.mxu0 %v545_v3  ;;  %577 = vmatprep.subr.bf16.mxu1 %v545_v3  ;;  %v553_v8 = vpack.c.bf16 %v236_v7, %v235_v6  ;;  %v237_v11 = vld [vmem:[#allocation6 + $0x30] sm:$0xff]  ;;  %v238_v12 = vld [vmem:[#allocation6 + $0x38] sm:$0xff]  ;;  %v239_v14 = vld [vmem:[#allocation6 + $0x40] sm:$0xff]  ;;  %p729_p4 = scmp.ne.s32.totalorder %s1019_s19, %s728_s12  ;;  %s820_s15 = smov [#allocation8]  }
  0x5e   : > { %548 = vmatpush3.bf16.msra.mxu0 %v545_v3  ;;  %585 = vmatpush3.bf16.msra.mxu1 %v545_v3  ;;  %v557_v13 = vpack.c.bf16 %v238_v12, %v237_v11  ;;  %v240_v15 = vld [vmem:[#allocation6 + $0x48] sm:$0xff]  ;;  %v241_v17 = vld [vmem:[#allocation6 + $0x50] sm:$0xff]  ;;  %v242_v18 = vld [vmem:[#allocation6 + $0x58] sm:$0xff]  ;;  %s732_s29 = sshll.u32 %s820_s15, 4  ;;  %s733_s29 = int_to_ptr.vmem [resolvable:$false] %s732_s29 }
  0x5f   : > { %550 = vmatprep.subr.bf16.mxu0 %v549_v5  ;;  %578 = vmatprep.subr.bf16.mxu1 %v549_v5  ;;  %v561_v16 = vpack.c.bf16 %v240_v15, %v239_v14  ;;  %v565_v19 = vpack.c.bf16 %v242_v18, %v241_v17  ;;  %v243_v20 = vld [vmem:[#allocation6 + $0x60] sm:$0xff]  ;;  %v244_v21 = vld [vmem:[#allocation6 + $0x68] sm:$0xff]  ;;  %v245_v23 = vld [vmem:[#allocation6 + $0x70] sm:$0xff]  ;;  %p730_p6 = pnand %p729_p4, %p937_p10  ;;  %s734_s30 = scalar_lea.vmem %s733_s29, 1024 }
  0x60   : > { %539 = vmatprep.mubr.f32.mxu0 %v227_v9  ;;  %542 = vmatprep.mubr.f32.mxu1 %v229_v10  ;;  %v569_v22 = vpack.c.bf16 %v244_v21, %v243_v20  ;;  %v246_v24 = vld [vmem:[#allocation6 + $0x78] sm:$0xff]  ;;  %v228_v26 = vld [vmem:[%s1002_s8 + $0x8] sm:$0xff]  ;;  %p735_p12 = scmp.lt.s32.totalorder %s1019_s19, %s733_s29  ;;  %p736_p11 = scmp.lt.s32.totalorder %s734_s30, %s728_s12 }
  0x61   : > { %v573_v25 = vpack.c.bf16 %v246_v24, %v245_v23  ;;  %v230_v27 = vld [vmem:[%s1002_s8 + $0x18] sm:$0xff]  ;;  %p731_p8 = pneg %p730_p6 }
  0x62   : > { %552 = vmatpush3.bf16.msra.mxu0 %v549_v5  ;;  %586 = vmatpush3.bf16.msra.mxu1 %v549_v5  ;;  %p737_p0 = por %p736_p11, %p735_p12 }
  0x63   : > { %554 = vmatprep.subr.bf16.mxu0 %v553_v8  ;;  %579 = vmatprep.subr.bf16.mxu1 %v553_v8 }
  0x64   : > { %p738_p5 = pnand %p737_p0, %p731_p8 }
  0x66   : > { %556 = vmatpush3.bf16.msra.mxu0 %v553_v8  ;;  %587 = vmatpush3.bf16.msra.mxu1 %v553_v8 }
  0x67   : > { %558 = vmatprep.subr.bf16.mxu0 %v557_v13  ;;  %580 = vmatprep.subr.bf16.mxu1 %v557_v13 }
  0x6a   : > { %560 = vmatpush3.bf16.msra.mxu0 %v557_v13  ;;  %588 = vmatpush3.bf16.msra.mxu1 %v557_v13 }
  0x6b   : > { %562 = vmatprep.subr.bf16.mxu0 %v561_v16  ;;  %581 = vmatprep.subr.bf16.mxu1 %v561_v16 }
  0x6e   : > { %564 = vmatpush3.bf16.msra.mxu0 %v561_v16  ;;  %589 = vmatpush3.bf16.msra.mxu1 %v561_v16 }
  0x6f   : > { %566 = vmatprep.subr.bf16.mxu0 %v565_v19  ;;  %582 = vmatprep.subr.bf16.mxu1 %v565_v19 }
  0x72   : > { %568 = vmatpush3.bf16.msra.mxu0 %v565_v19  ;;  %590 = vmatpush3.bf16.msra.mxu1 %v565_v19 }
  0x73   : > { %570 = vmatprep.subr.bf16.mxu0 %v569_v22  ;;  %583 = vmatprep.subr.bf16.mxu1 %v569_v22 }
  0x76   : > { %572 = vmatpush3.bf16.msra.mxu0 %v569_v22  ;;  %591 = vmatpush3.bf16.msra.mxu1 %v569_v22 }
  0x77   : > { %574 = vmatprep.subr.bf16.mxu0 %v573_v25  ;;  %584 = vmatprep.subr.bf16.mxu1 %v573_v25 }
  0x7a   : > { %576 = vmatpush3.bf16.msra.mxu0 %v573_v25  ;;  %592 = vmatpush3.bf16.msra.mxu1 %v573_v25 }
  0x7d   : > { %540 = vmatmul.mubr.f32.vlgmr.msra.gmra.mrb[0].mxu0 %v228_v26  ;;  %543 = vmatmul.mubr.f32.vlgmr.msra.gmra.mrb[0].mxu1 %v230_v27 }
 0x150   : > { %v541_v28 = vpop.f32.mrb[0].mxu0  ;;  %v544_v29 = vpop.f32.mrb[0].mxu1 }
 0x151   : > { %348 = vst [vmem:[%s211_s17 + $0x8] sm:$0xff] %v541_v28  ;;  %350 = vst [vmem:[%s211_s17 + $0x18] sm:$0xff] %v544_v29  ;;  %v313_v30 = vpop.f32.mrb[1].mxu0  ;;  %v323_v31 = vpop.f32.mrb[1].mxu1 }
 0x152   : > { %347 = vst [vmem:[%s211_s17] sm:$0xff] %v313_v30  ;;  %349 = vst [vmem:[%s211_s17 + $0x10] sm:$0xff] %v323_v31 }
 0x153   : > { %741 = shalt.err (!%p738_p5)
}
 0x154   : > { %s742_s23 = scalar_lea.hbm %s1024_s4, 512  ;;  %s746_s26 = scalar_lea.hbm %s1075_s2, 1024 }
 0x155   : > { %p743_p9 = scmp.ne.s32.totalorder %s1024_s4, %s742_s23  ;;  %p747_p3 = scmp.lt.u32.totalorder %s1024_s4, %s1075_s2 }
 0x156   : > { %p748_p7 = scmp.lt.u32.totalorder %s746_s26, %s742_s23  ;;  %p750_p4 = scmp.lt.u32.totalorder %s742_s23, %s1024_s4 }
 0x157   : > { %p744_p1 = pnand %p743_p9, %p937_p10 }
 0x158   : > { %p749_p13 = por %p748_p7, %p747_p3 }
 0x159   : > { %p745_p2 = pneg %p744_p1 }
 0x15a   : > { %p751_p6 = por %p750_p4, %p749_p13 }
 0x15c   : > { %p752_p8 = pnand %p751_p6, %p745_p2 }
 0x15e   : > { %755 = shalt.err (!%p752_p8)
}
 0x15f   : > { %s821_s8 = smov 128   ;;  %s822_s17 = smov 8  }
 0x160   : > { %599 = dma.vmem_to_hbm [thread:$0]  (%p937_p10), %s1019_s19, 512, %s1024_s4, %s352_s5, %s821_s8, %s821_s8, %s822_s17  }
 0x161 PF: > { %s381_s21 = sand.u32 1, %s794_s9   ;;  %p1093_p12 = scmp.ne.s32.totalorder %s1083_s20, 0 }
 0x162   : > { %p1094_p11 = scmp.ge.s32.totalorder %s814_s14, 2  ;;  %s382_s6 = scalar_lea.sflag [#allocation5], %s381_s21 }
 0x164   : > { %p610_p0 = pnand %p1094_p11, %p1093_p12 }
 0x166   : > { %789 = dma.done.wait (!%p610_p0), %s382_s6, 512  }
 0x167   : > { %791 = vsyncadd (!%p610_p0), %s382_s6, 4294966784  ;;  %s19_s14 = sadd.s32 1, %s814_s14   ;;  %s1095_s9 = smov %s798_s10 }
 0x168   : > { %p16_p5 = scmp.ge.s32.totalorder %s19_s14, 4   ;;  %s1096_s10 = smov %s802_s11 }
 0x169   : > { %s1097_s11 = smov %s946_s28  ;;  %s1098_s12 = smov %s810_s13 }
 0x16a   : > { %s1099_s13 = smov %s1101_s25  ;;  %18 = sbr.rel (!%p16_p5) target bundleno = 7 (0x7), region = 86 }
 0x171   :  { %387 = vsyncpa [#allocation4], 1 }
 0x172   :  { %389 = vsyncpa [#allocation4 + $0x1], 1 }
 0x173   :  { %390 = vsyncpa [#allocation7], 1 }
 0x174   :  { %391 = vsyncpa [#allocation5], 1 }
 0x175   :  { %393 = vsyncpa [#allocation5 + $0x1], 1 }

</bundles_post_ra>
